<compile_context>
chip_gen: v6e
topology: v6e:2x2x1
jax: 0.10.0
libtpu: 0.0.40
codegen_flags: <defaults>
</compile_context>

<pallas_src>
import functools

import numpy as np

import jax
import jax.numpy as jnp
from jax.experimental import pallas as pl
from jax.experimental.pallas import tpu as pltpu


# ------------------------------- fused kernel --------------------------------
def _fused_kernel(x_ref, wa_ref, ba_ref, wb_ref, bb_ref, o_ref, *,
                  bn, l0, l2, l3, w, ho, wo, taps):
    # x_ref : (bn, 1, l0)   flat images, pixels on the LANE axis (dense DMA)
    # wa_ref: (64, 9)       composed (conv2||conv3) o conv1 3x3 taps, channel-major
    # ba_ref: (64, 1)       composed bias
    # wb_ref: (16, 576)     conv4 weights, flattened tap-major / channel-minor
    # bb_ref: (16, 1)
    # o_ref : (bn, 16, ho*wo)  NCHW-flat output (wrapper only reshapes)
    ca = wa_ref.shape[0]
    wa = wa_ref[...]                                   # (64, 9)
    ba = ba_ref[...]                                   # (64, 1)
    wb = wb_ref[...].astype(jnp.bfloat16)              # (16, 576) hoisted cast

    cols = []
    for i in range(bn):
        # ---- stage A: composed 1->64, 3x3 conv. Cin=1 -> pure VPU shifted MACs.
        # Broadcast the image across sublanes ONCE, then slice per tap.
        xb = jnp.broadcast_to(x_ref[i], (ca, l0))      # (64, l0)
        acc = jnp.zeros((ca, l2), jnp.float32)
        for t, d in enumerate(taps):
            acc = acc + xb[:, d:d + l2] * wa[:, t:t + 1]
        a = jnp.maximum(acc + ba, 0.0)                 # relu(cat(conv2, conv3)) (64, l2)

        # ---- stage B im2col: K-concatenate the 9 shifted views once.
        cols.append(jnp.concatenate([a[:, d:d + l3] for d in taps], axis=0))  # (576, l3)

    im2col = cols[0] if bn == 1 else jnp.concatenate(cols, axis=1)            # (576, bn*l3)

    # ---- conv4 as ONE K=576 matmul (bf16 operands, f32 accumulation) ----
    out = jnp.dot(wb, im2col.astype(jnp.bfloat16),
                  preferred_element_type=jnp.float32) + bb_ref[...]           # (16, bn*l3)

    # ---- epilogue: gather the valid (ho, wo) window.  Channels already sit on
    # sublanes, so this is the NCHW layout directly -- no transpose needed.
    for i in range(bn):
        blk = out[:, i * l3:(i + 1) * l3]
        valid = jnp.concatenate([blk[:, r * w: r * w + wo] for r in range(ho)], axis=1)
        o_ref[i] = valid.astype(o_ref.dtype)


# ------------------------------ parameter init --------------------------------
def _make_conv_params(out_c, in_c, k, fill, bias_val):
    # create_conv/fill_conv_weight: weight.fill_(fill); weight += eye(k); then
    # per-out-channel: weight[i] += i.  bias.fill_(bias_val).
    w = jnp.full((out_c, in_c, k, k), float(fill), dtype=jnp.float32)
    w = w + jnp.eye(k, dtype=jnp.float32)
    w = w + jnp.arange(out_c, dtype=jnp.float32).reshape(out_c, 1, 1, 1)
    b = jnp.full((out_c,), float(bias_val), dtype=jnp.float32)
    return w, b


def _composed_params():
    """Constant-fold conv1 into conv2||conv3 (linear o linear, ReLU is after the cat)."""
    w1, b1 = _make_conv_params(16, 1, 2, 1, -2)
    w2, b2 = _make_conv_params(32, 16, 2, 2, -2)
    w3, b3 = _make_conv_params(32, 16, 2, 2, -2)
    w4, b4 = _make_conv_params(16, 64, 3, 10, 0)

    w23 = jnp.concatenate([w2, w3], axis=0)            # (64, 16, 2, 2): the torch.cat
    b23 = jnp.concatenate([b2, b3])                    # (64,)

    # wA[o, p+r, q+s] += sum_m w23[o,m,r,s] * w1[m,0,p,q]  (exact integers in f32)
    wA = jnp.zeros((64, 3, 3), jnp.float32)
    for p in range(2):
        for q in range(2):
            contrib = jnp.einsum('omrs,m->ors', w23, w1[:, 0, p, q])   # (64, 2, 2)
            wA = wA.at[:, p:p + 2, q:q + 2].add(contrib)
    bA = b23 + jnp.einsum('omrs,m->o', w23, b1)        # fold conv1 bias through conv2||3

    # conv4 weights flattened to match the im2col row order: row = tap*64 + channel.
    wB = jnp.transpose(w4, (0, 2, 3, 1)).reshape(16, 9 * 64)
    return wA.reshape(64, 9), bA.reshape(64, 1), wB, b4.reshape(16, 1)


# --------------------------------- forward ------------------------------------
@jax.jit
def pruning_test_model_concat(x):
    """x: (N, 1, H, W) float32 (NCHW, like PyTorch). Returns (N, 16, H-4, W-4)."""
    n, c, h, w = x.shape
    assert c == 1 and h >= 5 and w >= 5, "model needs Cin=1 and spatial >= 5"
    ho, wo = h - 4, w - 4
    l0 = h * w
    l2 = l0 - 2 * (w + 1)            # flat valid length after composed 3x3 stage A
    l3 = l0 - 4 * (w + 1)            # flat valid length after conv4 (3x3)
    taps = tuple(kh * w + kw for kh in range(3) for kw in range(3))

    wa, ba, wb, bb = _composed_params()

    # Batch folding: fewer, fatter grid steps.  2 parallel steps when the batch allows
    # (keeps both v7x TensorCores busy; costs one extra ~0.35us step on v5e/v6e).
    n_steps = 2 if (n >= 2 and n % 2 == 0) else n
    bn = n // n_steps

    # Pixels on the lane axis -> one dense contiguous DMA per image (pure view reshape).
    x_flat = x.astype(jnp.float32).reshape(n, 1, l0)

    kernel = functools.partial(_fused_kernel, bn=bn, l0=l0, l2=l2, l3=l3,
                               w=w, ho=ho, wo=wo, taps=taps)
    flops = 2 * n * (l2 * 9 * 64 + l3 * 9 * 64 * 16)
    bytes_accessed = 4 * (x_flat.size + wa.size + ba.size + wb.size + bb.size
                          + n * 16 * ho * wo)

    out = pl.pallas_call(
        kernel,
        out_shape=jax.ShapeDtypeStruct((n, 16, ho * wo), jnp.float32),
        grid=(n_steps,),
        in_specs=[
            pl.BlockSpec((bn, 1, l0), lambda i: (i, 0, 0)),      # per-chunk input
            pl.BlockSpec((64, 9), lambda i: (0, 0)),             # composed stage-A weights
            pl.BlockSpec((64, 1), lambda i: (0, 0)),             # composed stage-A bias
            pl.BlockSpec((16, 9 * 64), lambda i: (0, 0)),        # conv4 weights
            pl.BlockSpec((16, 1), lambda i: (0, 0)),             # conv4 bias
        ],
        out_specs=pl.BlockSpec((bn, 16, ho * wo), lambda i: (i, 0, 0)),
        compiler_params=pltpu.CompilerParams(dimension_semantics=("parallel",)),
        cost_estimate=pl.CostEstimate(flops=flops, transcendentals=0,
                                      bytes_accessed=bytes_accessed),
    )(x_flat, wa, ba, wb, bb)

    # Kernel already wrote NCHW-flat with only the valid window: pure reshape here.
    return out.reshape(n, 16, ho, wo)


# ------------------------------ plain-JAX reference ----------------------------
def _reference(x):
    w1, b1 = _make_conv_params(16, 1, 2, 1, -2)
    w2, b2 = _make_conv_params(32, 16, 2, 2, -2)
    w3, b3 = _make_conv_params(32, 16, 2, 2, -2)
    w4, b4 = _make_conv_params(16, 64, 3, 10, 0)

    def conv(v, wt, bs):
        y = jax.lax.conv_general_dilated(
            v, wt, window_strides=(1, 1), padding="VALID",
            dimension_numbers=("NCHW", "OIHW", "NCHW"),
            precision=jax.lax.Precision.HIGHEST)
        return y + bs.reshape(1, -1, 1, 1)

    x1 = conv(x, w1, b1)
    xc = jnp.maximum(jnp.concatenate([conv(x1, w2, b2), conv(x1, w3, b3)], axis=1), 0.0)
    return conv(xc, w4, b4)


if __name__ == "__main__":
    key = jax.random.PRNGKey(0)
    x = jax.random.normal(key, (2, 1, 8, 8), dtype=jnp.float32)   # conv1 needs Cin=1

    out = pruning_test_model_concat(x)
    jax.block_until_ready(out)
    assert out.shape == (2, 16, 4, 4), out.shape

    ref = _reference(x)
    np.testing.assert_allclose(np.asarray(out), np.asarray(ref), rtol=2e-2, atol=1e-2)
    print("KERNEL_OK")
</pallas_src>

<mosaic_0001>
module attributes {stable_mosaic.version = 11 : i64} {
  func.func @_fused_kernel(%arg0: i32, %arg1: memref<1x1x64xf32, #tpu.memory_space<vmem>>, %arg2: memref<64x9xf32, #tpu.memory_space<vmem>>, %arg3: memref<64x1xf32, #tpu.memory_space<vmem>>, %arg4: memref<16x576xf32, #tpu.memory_space<vmem>>, %arg5: memref<16x1xf32, #tpu.memory_space<vmem>>, %arg6: memref<1x16x16xf32, #tpu.memory_space<vmem>>) attributes {dimension_semantics = [#tpu.dimension_semantics<parallel>], iteration_bounds = array<i64: 2>, scalar_prefetch = 0 : i64, scratch_operands = 0 : i64, tpu.core_type = #tpu.core_type<tc>, window_params = [{transform_indices = @transform_0, window_bounds = array<i64: 1, 1, 64>}, {pipeline_mode = #tpu.pipeline_mode<synchronous>, transform_indices = @transform_1, window_bounds = array<i64: 64, 9>}, {pipeline_mode = #tpu.pipeline_mode<synchronous>, transform_indices = @transform_2, window_bounds = array<i64: 64, 1>}, {pipeline_mode = #tpu.pipeline_mode<synchronous>, transform_indices = @transform_3, window_bounds = array<i64: 16, 576>}, {pipeline_mode = #tpu.pipeline_mode<synchronous>, transform_indices = @transform_4, window_bounds = array<i64: 16, 1>}, {transform_indices = @transform_5, window_bounds = array<i64: 1, 16, 16>}]} {
    %c0 = arith.constant 0 : index
    %c0_0 = arith.constant 0 : index
    %0 = vector.load %arg2[%c0, %c0_0] : memref<64x9xf32, #tpu.memory_space<vmem>>, vector<64x9xf32>
    %c0_1 = arith.constant 0 : index
    %c0_2 = arith.constant 0 : index
    %1 = vector.load %arg3[%c0_1, %c0_2] : memref<64x1xf32, #tpu.memory_space<vmem>>, vector<64x1xf32>
    %c0_3 = arith.constant 0 : index
    %c0_4 = arith.constant 0 : index
    %2 = vector.load %arg4[%c0_3, %c0_4] : memref<16x576xf32, #tpu.memory_space<vmem>>, vector<16x576xf32>
    %3 = arith.truncf %2 : vector<16x576xf32> to vector<16x576xbf16>
    %c0_5 = arith.constant 0 : index
    %c0_6 = arith.constant 0 : index
    %c0_7 = arith.constant 0 : index
    %4 = vector.load %arg1[%c0_5, %c0_6, %c0_7] : memref<1x1x64xf32, #tpu.memory_space<vmem>>, vector<1x1x64xf32>
    %5 = vector.shape_cast %4 : vector<1x1x64xf32> to vector<1x64xf32>
    %6 = vector.shape_cast %5 : vector<1x64xf32> to vector<1x64xf32>
    %7 = vector.broadcast %6 : vector<1x64xf32> to vector<64x64xf32>
    %cst = arith.constant 0.000000e+00 : f32
    %8 = vector.broadcast %cst : f32 to vector<64x46xf32>
    %9 = vector.extract_strided_slice %7 {offsets = [0, 0], sizes = [64, 46], strides = [1, 1]} : vector<64x64xf32> to vector<64x46xf32>
    %10 = vector.extract_strided_slice %0 {offsets = [0, 0], sizes = [64, 1], strides = [1, 1]} : vector<64x9xf32> to vector<64x1xf32>
    %11 = vector.broadcast %10 : vector<64x1xf32> to vector<64x46xf32>
    %12 = arith.mulf %9, %11 : vector<64x46xf32>
    %13 = arith.addf %8, %12 : vector<64x46xf32>
    %14 = vector.extract_strided_slice %7 {offsets = [0, 1], sizes = [64, 46], strides = [1, 1]} : vector<64x64xf32> to vector<64x46xf32>
    %15 = vector.extract_strided_slice %0 {offsets = [0, 1], sizes = [64, 1], strides = [1, 1]} : vector<64x9xf32> to vector<64x1xf32>
    %16 = vector.broadcast %15 : vector<64x1xf32> to vector<64x46xf32>
    %17 = arith.mulf %14, %16 : vector<64x46xf32>
    %18 = arith.addf %13, %17 : vector<64x46xf32>
    %19 = vector.extract_strided_slice %7 {offsets = [0, 2], sizes = [64, 46], strides = [1, 1]} : vector<64x64xf32> to vector<64x46xf32>
    %20 = vector.extract_strided_slice %0 {offsets = [0, 2], sizes = [64, 1], strides = [1, 1]} : vector<64x9xf32> to vector<64x1xf32>
    %21 = vector.broadcast %20 : vector<64x1xf32> to vector<64x46xf32>
    %22 = arith.mulf %19, %21 : vector<64x46xf32>
    %23 = arith.addf %18, %22 : vector<64x46xf32>
    %24 = vector.extract_strided_slice %7 {offsets = [0, 8], sizes = [64, 46], strides = [1, 1]} : vector<64x64xf32> to vector<64x46xf32>
    %25 = vector.extract_strided_slice %0 {offsets = [0, 3], sizes = [64, 1], strides = [1, 1]} : vector<64x9xf32> to vector<64x1xf32>
    %26 = vector.broadcast %25 : vector<64x1xf32> to vector<64x46xf32>
    %27 = arith.mulf %24, %26 : vector<64x46xf32>
    %28 = arith.addf %23, %27 : vector<64x46xf32>
    %29 = vector.extract_strided_slice %7 {offsets = [0, 9], sizes = [64, 46], strides = [1, 1]} : vector<64x64xf32> to vector<64x46xf32>
    %30 = vector.extract_strided_slice %0 {offsets = [0, 4], sizes = [64, 1], strides = [1, 1]} : vector<64x9xf32> to vector<64x1xf32>
    %31 = vector.broadcast %30 : vector<64x1xf32> to vector<64x46xf32>
    %32 = arith.mulf %29, %31 : vector<64x46xf32>
    %33 = arith.addf %28, %32 : vector<64x46xf32>
    %34 = vector.extract_strided_slice %7 {offsets = [0, 10], sizes = [64, 46], strides = [1, 1]} : vector<64x64xf32> to vector<64x46xf32>
    %35 = vector.extract_strided_slice %0 {offsets = [0, 5], sizes = [64, 1], strides = [1, 1]} : vector<64x9xf32> to vector<64x1xf32>
    %36 = vector.broadcast %35 : vector<64x1xf32> to vector<64x46xf32>
    %37 = arith.mulf %34, %36 : vector<64x46xf32>
    %38 = arith.addf %33, %37 : vector<64x46xf32>
    %39 = vector.extract_strided_slice %7 {offsets = [0, 16], sizes = [64, 46], strides = [1, 1]} : vector<64x64xf32> to vector<64x46xf32>
    %40 = vector.extract_strided_slice %0 {offsets = [0, 6], sizes = [64, 1], strides = [1, 1]} : vector<64x9xf32> to vector<64x1xf32>
    %41 = vector.broadcast %40 : vector<64x1xf32> to vector<64x46xf32>
    %42 = arith.mulf %39, %41 : vector<64x46xf32>
    %43 = arith.addf %38, %42 : vector<64x46xf32>
    %44 = vector.extract_strided_slice %7 {offsets = [0, 17], sizes = [64, 46], strides = [1, 1]} : vector<64x64xf32> to vector<64x46xf32>
    %45 = vector.extract_strided_slice %0 {offsets = [0, 7], sizes = [64, 1], strides = [1, 1]} : vector<64x9xf32> to vector<64x1xf32>
    %46 = vector.broadcast %45 : vector<64x1xf32> to vector<64x46xf32>
    %47 = arith.mulf %44, %46 : vector<64x46xf32>
    %48 = arith.addf %43, %47 : vector<64x46xf32>
    %49 = vector.extract_strided_slice %7 {offsets = [0, 18], sizes = [64, 46], strides = [1, 1]} : vector<64x64xf32> to vector<64x46xf32>
    %50 = vector.extract_strided_slice %0 {offsets = [0, 8], sizes = [64, 1], strides = [1, 1]} : vector<64x9xf32> to vector<64x1xf32>
    %51 = vector.broadcast %50 : vector<64x1xf32> to vector<64x46xf32>
    %52 = arith.mulf %49, %51 : vector<64x46xf32>
    %53 = arith.addf %48, %52 : vector<64x46xf32>
    %54 = vector.broadcast %1 : vector<64x1xf32> to vector<64x46xf32>
    %55 = arith.addf %53, %54 : vector<64x46xf32>
    %cst_8 = arith.constant 0.000000e+00 : f32
    %56 = vector.broadcast %cst_8 : f32 to vector<64x46xf32>
    %57 = arith.maximumf %55, %56 : vector<64x46xf32>
    %58 = vector.extract_strided_slice %57 {offsets = [0, 0], sizes = [64, 28], strides = [1, 1]} : vector<64x46xf32> to vector<64x28xf32>
    %59 = vector.extract_strided_slice %57 {offsets = [0, 1], sizes = [64, 28], strides = [1, 1]} : vector<64x46xf32> to vector<64x28xf32>
    %60 = vector.extract_strided_slice %57 {offsets = [0, 2], sizes = [64, 28], strides = [1, 1]} : vector<64x46xf32> to vector<64x28xf32>
    %61 = vector.extract_strided_slice %57 {offsets = [0, 8], sizes = [64, 28], strides = [1, 1]} : vector<64x46xf32> to vector<64x28xf32>
    %62 = vector.extract_strided_slice %57 {offsets = [0, 9], sizes = [64, 28], strides = [1, 1]} : vector<64x46xf32> to vector<64x28xf32>
    %63 = vector.extract_strided_slice %57 {offsets = [0, 10], sizes = [64, 28], strides = [1, 1]} : vector<64x46xf32> to vector<64x28xf32>
    %64 = vector.extract_strided_slice %57 {offsets = [0, 16], sizes = [64, 28], strides = [1, 1]} : vector<64x46xf32> to vector<64x28xf32>
    %65 = vector.extract_strided_slice %57 {offsets = [0, 17], sizes = [64, 28], strides = [1, 1]} : vector<64x46xf32> to vector<64x28xf32>
    %66 = vector.extract_strided_slice %57 {offsets = [0, 18], sizes = [64, 28], strides = [1, 1]} : vector<64x46xf32> to vector<64x28xf32>
    %67 = tpu.concatenate %58, %59, %60, %61, %62, %63, %64, %65, %66 in 0 : vector<64x28xf32>, vector<64x28xf32>, vector<64x28xf32>, vector<64x28xf32>, vector<64x28xf32>, vector<64x28xf32>, vector<64x28xf32>, vector<64x28xf32>, vector<64x28xf32> -> vector<576x28xf32>
    %68 = arith.truncf %67 : vector<576x28xf32> to vector<576x28xbf16>
    %cst_9 = arith.constant dense<0.000000e+00> : vector<16x28xf32>
    %69 = tpu.matmul %3, %68, %cst_9 {dimension_numbers = #tpu.dot_dimension_numbers<[1], [0], [0], [1], [0, 0, 1, 1], [], []>} : vector<16x576xbf16>, vector<576x28xbf16>, vector<16x28xf32> -> vector<16x28xf32>
    %c0_10 = arith.constant 0 : index
    %c0_11 = arith.constant 0 : index
    %70 = vector.load %arg5[%c0_10, %c0_11] : memref<16x1xf32, #tpu.memory_space<vmem>>, vector<16x1xf32>
    %71 = vector.broadcast %70 : vector<16x1xf32> to vector<16x28xf32>
    %72 = arith.addf %69, %71 : vector<16x28xf32>
    %73 = vector.extract_strided_slice %72 {offsets = [0, 0], sizes = [16, 4], strides = [1, 1]} : vector<16x28xf32> to vector<16x4xf32>
    %74 = vector.extract_strided_slice %72 {offsets = [0, 8], sizes = [16, 4], strides = [1, 1]} : vector<16x28xf32> to vector<16x4xf32>
    %75 = vector.extract_strided_slice %72 {offsets = [0, 16], sizes = [16, 4], strides = [1, 1]} : vector<16x28xf32> to vector<16x4xf32>
    %76 = vector.extract_strided_slice %72 {offsets = [0, 24], sizes = [16, 4], strides = [1, 1]} : vector<16x28xf32> to vector<16x4xf32>
    %77 = tpu.concatenate %73, %74, %75, %76 in 1 : vector<16x4xf32>, vector<16x4xf32>, vector<16x4xf32>, vector<16x4xf32> -> vector<16x16xf32>
    %c0_12 = arith.constant 0 : index
    %c0_13 = arith.constant 0 : index
    %c0_14 = arith.constant 0 : index
    %78 = vector.load %arg6[%c0_12, %c0_13, %c0_14] : memref<1x16x16xf32, #tpu.memory_space<vmem>>, vector<1x16x16xf32>
    %79 = vector.shape_cast %78 : vector<1x16x16xf32> to vector<16x16xf32>
    %80 = vector.shape_cast %77 : vector<16x16xf32> to vector<1x16x16xf32>
    tpu.vector_store %arg6[%c0_12, %c0_13, %c0_14], %80 {strides = array<i32>} : memref<1x16x16xf32, #tpu.memory_space<vmem>>, vector<1x16x16xf32>,
    return
  }
  func.func @transform_0(%arg0: i32) -> (i32, i32, i32) {
    %c0_i32 = arith.constant 0 : i32
    %c0_i32_0 = arith.constant 0 : i32
    %c0_i32_1 = arith.constant 0 : i32
    return %arg0, %c0_i32, %c0_i32_0 : i32, i32, i32
  }
  func.func @transform_1(%arg0: i32) -> (i32, i32) {
    %c0_i32 = arith.constant 0 : i32
    %c0_i32_0 = arith.constant 0 : i32
    %c0_i32_1 = arith.constant 0 : i32
    return %c0_i32, %c0_i32_0 : i32, i32
  }
  func.func @transform_2(%arg0: i32) -> (i32, i32) {
    %c0_i32 = arith.constant 0 : i32
    %c0_i32_0 = arith.constant 0 : i32
    %c0_i32_1 = arith.constant 0 : i32
    return %c0_i32, %c0_i32_0 : i32, i32
  }
  func.func @transform_3(%arg0: i32) -> (i32, i32) {
    %c0_i32 = arith.constant 0 : i32
    %c0_i32_0 = arith.constant 0 : i32
    %c0_i32_1 = arith.constant 0 : i32
    return %c0_i32, %c0_i32_0 : i32, i32
  }
  func.func @transform_4(%arg0: i32) -> (i32, i32) {
    %c0_i32 = arith.constant 0 : i32
    %c0_i32_0 = arith.constant 0 : i32
    %c0_i32_1 = arith.constant 0 : i32
    return %c0_i32, %c0_i32_0 : i32, i32
  }
  func.func @transform_5(%arg0: i32) -> (i32, i32, i32) {
    %c0_i32 = arith.constant 0 : i32
    %c0_i32_0 = arith.constant 0 : i32
    %c0_i32_1 = arith.constant 0 : i32
    return %arg0, %c0_i32, %c0_i32_0 : i32, i32, i32
  }
}

</mosaic_0001>

<bundles_post_ra>
// kernel: pruning_test_model_concat.1
= control target key start
LH: loop header
LB: loop body
LE: loop exit
PB: predicated region body
PF: predicated region fallthrough
CT: control target
= control target key end

     0   :  { %s1829_s18 = smov 0   ;;  %s2414_s0 = inlined_call_operand.vmem [shape: f32[2,1,64], index: 0, kind: input, shape index: {}]   ;;  %s2415_s1 = inlined_call_operand.vmem [shape: f32[64,9], index: 1, kind: input, shape index: {}]   ;;  %s2416_s2 = inlined_call_operand.vmem [shape: f32[64,1], index: 2, kind: input, shape index: {}]   ;;  %s2417_s3 = inlined_call_operand.vmem [shape: f32[16,576], index: 3, kind: input, shape index: {}]   ;;  %s2418_s4 = inlined_call_operand.vmem [shape: f32[16,1], index: 4, kind: input, shape index: {}]   ;;  %s2419_s5 = inlined_call_operand.vmem [shape: f32[2,16,16], index: 5, kind: output, shape index: {}]  }
   0x1 LB: > { %s1469_s19 = sadd.s32 4294967295, %s1776_s18   ;;  %p1473_p0 = scmp.ge.s32.totalorder %s1776_s18, 1  ;;  %s1776_s18 = sphi %s1829_s18, %s15_s18  }
   0x2   : > { %p185_p1 = scmp.lt.s32.totalorder %s1776_s18, 3 }
   0x4   : > { %p186_p2 = pnand %p1473_p0, %p185_p1 }
   0x5   : > { %p211_p3 = scmp.lt.s32.totalorder (!%p186_p2), %s1469_s19, 1  ;;  %s1787_s14 = smov (!%p186_p2), 127  }
   0x6   : > { %189 = sbr.rel (%p186_p2) target bundleno = 1023 (0x3ff), region = 40  ;;  %s1788_s15 = smov (!%p186_p2), 120  }
   0x7   : > { %s1789_s16 = smov (!%p186_p2), 126   ;;  %s1790_s17 = smov (!%p186_p2), 119  }
   0x8   : > { %s1791_s20 = smov (!%p186_p2), 118   ;;  %s1792_s21 = smov (!%p186_p2), 112  }
   0x9   : > { %s1793_s26 = smov (!%p186_p2), 111   ;;  %s1794_s27 = smov (!%p186_p2), 110  }
   0xa   : > { %s1797_s24 = smov (!%p186_p2), 124   ;;  %s1798_s25 = smov (!%p186_p2), 116  }
   0xb   : > { %v1840_v0 = vld [vmem:[%s2415_s1 + $0x10] sm:$0xff]  ;;  %v1845_v1 = vld [vmem:[%s2415_s1] sm:$0xff]  ;;  %v1778_v2 = vmov 0   ;;  %v1779_v3 = vmov 1   ;;  %v1853_v4 = vld [vmem:[%s2415_s1 + $0x18] sm:$0xff]  ;;  %v1780_v8 = vmov 2  }
   0xc   : > { %1571 = vset.pattern.permute.xlu1 %v1778_v2  ;;  %1572 = vset.pattern.permute.xlu0 %v1779_v3  ;;  %v1860_v5 = vld [vmem:[%s2415_s1 + $0x28] sm:$0xff]  ;;  %v1867_v6 = vld [vmem:[%s2415_s1 + $0x38] sm:$0xff]  ;;  %v1883_v9 = vld [vmem:[%s2415_s1 + $0x20] sm:$0xff]  ;;  %v1781_v11 = vmov 3   ;;  %v1782_v12 = vmov 4   ;;  %v1783_v13 = vmov 5  }
   0xd   : > { %270 = vperm.xlu1 %1571, %v1840_v0   ;;  %315 = vperm.xlu0 %1572, %v1845_v1   ;;  %v1874_v7 = vld [vmem:[%s2415_s1 + $0x8] sm:$0xff]  ;;  %v1889_v10 = vld [vmem:[%s2415_s1 + $0x30] sm:$0xff]  ;;  %v1784_v14 = vmov 6   ;;  %v1785_v15 = vmov 7   ;;  %s2421_s19 = smov (!%p211_p3, %s1469_s19), 1  ;;  %v1786_v20 = vmov 8  }
   0xe   : > { %s213_s13 = scalar_lea.vmem %s2414_s0, %s2421_s19  ;;  %vm1796_vm0 = vmmov 0   ;;  %vm1258_vm1 = vcmask 523264   ;;  %vm1405_vm2 = vcmask 31744   ;;  %vm1408_vm3 = vcmask 64512  }
   0xf   : > { %v1939_v17 = vld [vmem:[%s213_s13] ss:$0 sm:$0xff]  ;;  %vm1411_vm4 = vcmask 97280   ;;  %vm1414_vm5 = vcmask 130048  }
  0x11   : > { %275 = vperm.xlu1 %1571, %v1853_v4   ;;  %327 = vperm.xlu0 %1572, %v1853_v4  }
  0x15   : > { %285 = vperm.xlu1 %1571, %v1860_v5   ;;  %335 = vperm.xlu0 %1572, %v1860_v5  }
  0x19   : > { %295 = vperm.xlu1 %1571, %v1867_v6   ;;  %343 = vperm.xlu0 %1572, %v1867_v6  }
  0x1d   : > { %1573 = vset.pattern.permute.xlu1 %v1779_v3  ;;  %1575 = vset.pattern.permute.xlu0 %v1780_v8 }
  0x1e   : > { %319 = vperm.xlu1 %1573, %v1874_v7   ;;  %399 = vperm.xlu0 %1575, %v1874_v7  }
  0x22   : > { %323 = vperm.xlu1 %1573, %v1840_v0   ;;  %415 = vperm.xlu0 %1575, %v1860_v5  }
  0x26   : > { %331 = vperm.xlu1 %1573, %v1883_v9   ;;  %1578 = vset.pattern.permute.xlu0 %v1781_v11 }
  0x27   : > { %499 = vperm.xlu0 %1578, %v1889_v10  }
  0x2a   : > { %339 = vperm.xlu1 %1573, %v1889_v10  }
  0x2b   : > { %491 = vperm.xlu0 %1578, %v1883_v9  }
  0x2e   : > { %1574 = vset.pattern.permute.xlu1 %v1780_v8 }
  0x2f   : > { %395 = vperm.xlu1 %1574, %v1845_v1   ;;  %1583 = vset.pattern.permute.xlu0 %v1782_v12 }
  0x30   : > { %571 = vperm.xlu0 %1583, %v1883_v9  }
  0x33   : > { %419 = vperm.xlu1 %1574, %v1889_v10  }
  0x34   : > { %1584 = vset.pattern.permute.xlu0 %v1783_v13 }
  0x35   : > { %663 = vperm.xlu0 %1584, %v1867_v6  }
  0x37   : > { %423 = vperm.xlu1 %1574, %v1867_v6  }
  0x39   : > { %651 = vperm.xlu0 %1584, %v1883_v9  }
  0x3b   : > { %1576 = vset.pattern.permute.xlu1 %v1781_v11 }
  0x3c   : > { %503 = vperm.xlu1 %1576, %v1867_v6  }
  0x40   : > { %1577 = vset.pattern.permute.xlu1 %v1780_v8 }
  0x41   : > { %411 = vperm.xlu1 %1577, %v1883_v9  }
  0x45   : > { %1579 = vset.pattern.permute.xlu1 %v1782_v12 }
  0x46   : > { %579 = vperm.xlu1 %1579, %v1889_v10  }
  0x4a   : > { %583 = vperm.xlu1 %1579, %v1867_v6  }
  0x4e   : > { %1580 = vset.pattern.permute.xlu1 %v1781_v11 }
  0x4f   : > { %495 = vperm.xlu1 %1580, %v1860_v5  }
  0x53   : > { %1581 = vset.pattern.permute.xlu1 %v1783_v13 }
  0x54   : > { %659 = vperm.xlu1 %1581, %v1889_v10  }
  0x58   : > { %1582 = vset.pattern.permute.xlu1 %v1780_v8 }
  0x59   : > { %403 = vperm.xlu1 %1582, %v1840_v0  }
  0x5d   : > { %407 = vperm.xlu1 %1582, %v1853_v4  }
  0x61   : > { %1585 = vset.pattern.permute.xlu1 %v1782_v12 }
  0x62   : > { %575 = vperm.xlu1 %1585, %v1860_v5  }
  0x66   : > { %1586 = vset.pattern.permute.xlu1 %v1784_v14 }
  0x67   : > { %739 = vperm.xlu1 %1586, %v1889_v10  }
  0x6b   : > { %1587 = vset.pattern.permute.xlu1 %v1781_v11 }
  0x6c   : > { %483 = vperm.xlu1 %1587, %v1840_v0  }
  0x70   : > { %487 = vperm.xlu1 %1587, %v1853_v4  }
  0x74   : > { %1588 = vset.pattern.permute.xlu1 %v1783_v13 }
  0x75   : > { %655 = vperm.xlu1 %1588, %v1860_v5  }
  0x79   : > { %1589 = vset.pattern.permute.xlu1 %v1785_v15 }
  0x7a   : > { %819 = vperm.xlu1 %1589, %v1889_v10  }
  0x7e   : > { %1590 = vset.pattern.permute.xlu1 %v1782_v12 }
  0x7f   : > { %563 = vperm.xlu1 %1590, %v1840_v0  }
  0x83   : > { %567 = vperm.xlu1 %1590, %v1853_v4  }
  0x87   : > { %1591 = vset.pattern.permute.xlu1 %v1784_v14 }
  0x88   : > { %v1932_v16 = vpop.permute.xlu1 %270  ;;  %735 = vperm.xlu1 %1591, %v1860_v5   ;;  %v316_v19 = vpop.permute.xlu0 %315 }
  0x89   : > { %v346_v21 = vmul.f32 %v1939_v17, %v316_v19 }
  0x8c   : > { %v1941_v18 = vpop.permute.xlu1 %275  ;;  %1592 = vset.pattern.permute.xlu1 %v1786_v20  ;;  %v328_v26 = vpop.permute.xlu0 %327 }
  0x8d   : > { %899 = vperm.xlu1 %1592, %v1889_v10   ;;  %v349_v28 = vmul.f32 %v1939_v17, %v328_v26 }
  0x90   : > { %v1946_v22 = vpop.permute.xlu1 %285  ;;  %v336_v30 = vpop.permute.xlu0 %335 }
  0x91   : > { %362 = vrot.lane.b32.xlu1 %v346_v21, %s1787_s14  ;;  %v351_v32 = vmul.f32 %v1939_v17, %v336_v30 }
  0x92   : > { %1593 = vset.pattern.permute.xlu1 %v1781_v11 }
  0x94   : > { %v1949_v23 = vpop.permute.xlu1 %295  ;;  %v344_v39 = vpop.permute.xlu0 %343 }
  0x95   : > { %v353_v40 = vmul.f32 %v1939_v17, %v344_v39 }
  0x99   : > { %v320_v24 = vpop.permute.xlu1 %319  ;;  %v2012_v49 = vpop.permute.xlu0 %399 }
  0x9a   : > { %v347_v25 = vmul.f32 %v1939_v17, %v320_v24 }
  0x9c   : > { %364 = vrot.lane.b32.xlu0 %v347_v25, %s1787_s14 }
  0x9d   : > { %v324_v27 = vpop.permute.xlu1 %323  ;;  %v416_v52 = vpop.permute.xlu0 %415 }
  0x9e   : > { %v348_v29 = vmul.f32 %v1939_v17, %v324_v27 }
  0xa0   : > { %368 = vrot.lane.b32.xlu0 %v349_v28, %s1787_s14  ;;  %366 = vrot.lane.b32.xlu1 %v348_v29, %s1787_s14 }
  0xa1   : > { %v332_v31 = vpop.permute.xlu1 %331 }
  0xa2   : > { %v350_v33 = vmul.f32 %v1939_v17, %v332_v31  ;;  %v500_v54 = vpop.permute.xlu0 %499 }
  0xa3   : > { %v512_v56 = vmul.f32 %v1939_v17, %v500_v54 }
  0xa4   : > { %372 = vrot.lane.b32.xlu0 %v351_v32, %s1787_s14  ;;  %370 = vrot.lane.b32.xlu1 %v350_v33, %s1787_s14 }
  0xa5   : > { %v340_v34 = vpop.permute.xlu1 %339 }
  0xa6   : > { %v352_v35 = vmul.f32 %v1939_v17, %v340_v34  ;;  %v492_v60 = vpop.permute.xlu0 %491 }
  0xa7   : > { %v510_v63 = vmul.f32 %v1939_v17, %v492_v60 }
  0xa8   : > { %643 = vperm.xlu0 %1584, %v1840_v0   ;;  %374 = vrot.lane.b32.xlu1 %v352_v35, %s1787_s14 }
  0xaa   : > { %v1964_v36 = vpop.permute.xlu1 %395 }
  0xac   : > { %1594 = vset.pattern.permute.xlu0 %v1784_v14  ;;  %475 = vperm.xlu1 %1593, %v1845_v1  }
  0xad   : > { %743 = vperm.xlu0 %1594, %v1867_v6  }
  0xae   : > { %v1969_v37 = vpop.permute.xlu1 %419 }
  0xaf   : > { %v432_v59 = vmul.f32 %v1939_v17, %v1969_v37 }
  0xb0   : > { %479 = vperm.xlu1 %1593, %v1874_v7  }
  0xb1   : > { %731 = vperm.xlu0 %1594, %v1883_v9  }
  0xb2   : > { %v1973_v38 = vpop.permute.xlu1 %423 }
  0xb4   : > { %1595 = vset.pattern.permute.xlu1 %v1783_v13 }
  0xb5   : > { %723 = vperm.xlu0 %1594, %v1840_v0   ;;  %647 = vperm.xlu1 %1595, %v1853_v4  }
  0xb7   : > { %v1979_v41 = vpop.permute.xlu1 %503 }
  0xb8   : > { %v513_v3 = vmul.f32 %v1939_v17, %v1979_v41  ;;  %v235_v41 = vld [vmem:[%s2416_s2 + $0x38] sm:$0xff] }
  0xb9   : > { %376 = vrot.lane.b32.xlu0 %v353_v40, %s1787_s14  ;;  %1596 = vset.pattern.permute.xlu1 %v1785_v15 }
  0xba   : > { %811 = vperm.xlu1 %1596, %v1883_v9  }
  0xbc   : > { %v412_v42 = vpop.permute.xlu1 %411 }
  0xbd   : > { %719 = vperm.xlu0 %1594, %v1874_v7   ;;  %v430_v58 = vmul.f32 %v1939_v17, %v412_v42 }
  0xbe   : > { %1597 = vset.pattern.permute.xlu1 %v1782_v12 }
  0xbf   : > { %555 = vperm.xlu1 %1597, %v1845_v1  }
  0xc1   : > { %1603 = vset.pattern.permute.xlu0 %v1785_v15  ;;  %v580_v43 = vpop.permute.xlu1 %579 }
  0xc2   : > { %823 = vperm.xlu0 %1603, %v1867_v6   ;;  %v592_v62 = vmul.f32 %v1939_v17, %v580_v43 }
  0xc3   : > { %559 = vperm.xlu1 %1597, %v1874_v7  }
  0xc5   : > { %v1990_v44 = vpop.permute.xlu1 %583 }
  0xc6   : > { %815 = vperm.xlu0 %1603, %v1860_v5  }
  0xc7   : > { %1598 = vset.pattern.permute.xlu1 %v1784_v14 }
  0xc8   : > { %727 = vperm.xlu1 %1598, %v1853_v4  }
  0xca   : > { %803 = vperm.xlu0 %1603, %v1840_v0   ;;  %v1996_v45 = vpop.permute.xlu1 %495 }
  0xcb   : > { %v511_v12 = vmul.f32 %v1939_v17, %v1996_v45 }
  0xcc   : > { %1599 = vset.pattern.permute.xlu1 %v1786_v20 }
  0xcd   : > { %891 = vperm.xlu1 %1599, %v1883_v9  }
  0xce   : > { %795 = vperm.xlu0 %1603, %v1845_v1  }
  0xcf   : > { %v660_v46 = vpop.permute.xlu1 %659 }
  0xd1   : > { %1600 = vset.pattern.permute.xlu1 %v1783_v13 }
  0xd2   : > { %1605 = vset.pattern.permute.xlu0 %v1786_v20  ;;  %635 = vperm.xlu1 %1600, %v1845_v1  }
  0xd3   : > { %903 = vperm.xlu0 %1605, %v1867_v6   ;;  %v572_v6 = vpop.permute.xlu0 %571 }
  0xd4   : > { %v404_v47 = vpop.permute.xlu1 %403  ;;  %v590_v8 = vmul.f32 %v1939_v17, %v572_v6 }
  0xd6   : > { %639 = vperm.xlu1 %1600, %v1874_v7  }
  0xd7   : > { %895 = vperm.xlu0 %1605, %v1860_v5   ;;  %v664_v11 = vpop.permute.xlu0 %663 }
  0xd8   : > { %v2007_v48 = vpop.permute.xlu1 %407 }
  0xd9   : > { %v429_v21 = vmul.f32 %v1939_v17, %v2007_v48 }
  0xda   : > { %1601 = vset.pattern.permute.xlu1 %v1785_v15 }
  0xdb   : > { %879 = vperm.xlu0 %1605, %v1874_v7   ;;  %807 = vperm.xlu1 %1601, %v1853_v4   ;;  %v652_v19 = vpop.permute.xlu0 %651 }
  0xdd   : > { %v2014_v50 = vpop.permute.xlu1 %575 }
  0xde   : > { %v591_v27 = vmul.f32 %v1939_v17, %v2014_v50 }
  0xdf   : > { %1608 = vset.pattern.permute.xlu0 %v1778_v2  ;;  %1602 = vset.pattern.permute.xlu1 %v1784_v14  ;;  %v673_v14 = vmul.f32 %v1939_v17, %v664_v11 }
  0xe0   : > { %260 = vperm.xlu0 %1608, %v1845_v1   ;;  %715 = vperm.xlu1 %1602, %v1845_v1  }
  0xe2   : > { %v740_v51 = vpop.permute.xlu1 %739 }
  0xe3   : > { %v752_v13 = vmul.f32 %v1939_v17, %v740_v51 }
  0xe4   : > { %265 = vperm.xlu0 %1608, %v1874_v7   ;;  %1604 = vset.pattern.permute.xlu1 %v1786_v20 }
  0xe5   : > { %883 = vperm.xlu1 %1604, %v1840_v0   ;;  %v433_v0 = vmul.f32 %v1939_v17, %v1973_v38 }
  0xe7   : > { %v2023_v53 = vpop.permute.xlu1 %483 }
  0xe8   : > { %280 = vperm.xlu0 %1608, %v1883_v9   ;;  %v593_v9 = vmul.f32 %v1939_v17, %v1990_v44  ;;  %v508_v44 = vmul.f32 %v1939_v17, %v2023_v53 }
  0xe9   : > { %887 = vperm.xlu1 %1604, %v1853_v4   ;;  %v672_v4 = vmul.f32 %v1939_v17, %v660_v46  ;;  %v670_v46 = vmul.f32 %v1939_v17, %v652_v19 }
  0xeb   : > { %v488_v55 = vpop.permute.xlu1 %487 }
  0xec   : > { %290 = vperm.xlu0 %1608, %v1889_v10   ;;  %v509_v25 = vmul.f32 %v1939_v17, %v488_v55 }
  0xed   : > { %1606 = vset.pattern.permute.xlu1 %v1785_v15 }
  0xee   : > { %799 = vperm.xlu1 %1606, %v1874_v7   ;;  %v428_v7 = vmul.f32 %v1939_v17, %v404_v47 }
  0xf0   : > { %534 = vrot.lane.b32.xlu0 %v512_v56, %s1788_s15  ;;  %v656_v57 = vpop.permute.xlu1 %655 }
  0xf1   : > { %v671_v28 = vmul.f32 %v1939_v17, %v656_v57 }
  0xf2   : > { %1607 = vset.pattern.permute.xlu1 %v1786_v20  ;;  %v234_v20 = vld [vmem:[%s2416_s2 + $0x30] sm:$0xff] }
  0xf3   : > { %875 = vperm.xlu1 %1607, %v1845_v1  }
  0xf4   : > { %450 = vrot.lane.b32.xlu0 %v430_v58, %s1789_s16  ;;  %v427_v58 = vmul.f32 %v1939_v17, %v2012_v49 }
  0xf5   : > { %v2038_v61 = vpop.permute.xlu1 %819 }
  0xf6   : > { %v832_v50 = vmul.f32 %v1939_v17, %v2038_v61 }
  0xf7   : > { %454 = vrot.lane.b32.xlu1 %v432_v59, %s1789_s16 }
  0xf8   : > { %614 = vrot.lane.b32.xlu0 %v592_v62, %s1790_s17  ;;  %1609 = vset.pattern.permute.xlu1 %v1778_v2  ;;  %v431_v2 = vmul.f32 %v1939_v17, %v416_v52  ;;  %v426_v52 = vmul.f32 %v1939_v17, %v1964_v36 }
  0xfa   : > { %v2047_v1 = vpop.permute.xlu1 %563 }
  0xfb   : > { %456 = vrot.lane.b32.xlu1 %v433_v0, %s1789_s16  ;;  %v588_v56 = vmul.f32 %v1939_v17, %v2047_v1  ;;  %v232_v1 = vld [vmem:[%s2416_s2 + $0x20] sm:$0xff] }
  0xfc   : > { %530 = vrot.lane.b32.xlu0 %v510_v63, %s1788_s15 }
  0xfe   : > { %v2055_v5 = vpop.permute.xlu1 %567 }
  0xff   : > { %536 = vrot.lane.b32.xlu1 %v513_v3, %s1788_s15  ;;  %v589_v61 = vmul.f32 %v1939_v17, %v2055_v5 }
 0x100   : > { %694 = vrot.lane.b32.xlu0 %v672_v4, %s1791_s20 }
 0x103   : > { %452 = vrot.lane.b32.xlu1 %v431_v2, %s1789_s16  ;;  %v2065_v10 = vpop.permute.xlu1 %735 }
 0x104   : > { %446 = vrot.lane.b32.xlu0 %v428_v7, %s1789_s16  ;;  %v751_v0 = vmul.f32 %v1939_v17, %v2065_v10 }
 0x107   : > { %616 = vrot.lane.b32.xlu1 %v593_v9, %s1790_s17 }
 0x108   : > { %610 = vrot.lane.b32.xlu0 %v590_v8, %s1790_s17  ;;  %v2073_v15 = vpop.permute.xlu1 %899  ;;  %v233_v8 = vld [vmem:[%s2416_s2 + $0x28] sm:$0xff] }
 0x109   : > { %v912_v49 = vmul.f32 %v1939_v17, %v2073_v15 }
 0x10b   : > { %532 = vrot.lane.b32.xlu1 %v511_v12, %s1788_s15 }
 0x10c   : > { %774 = vrot.lane.b32.xlu0 %v752_v13, %s1792_s21  ;;  %v2083_v24 = vpop.permute.xlu1 %362 }
 0x10e   : > { %v2086_v26 = vpop.permute.xlu0 %364 }
 0x10f   : > { %696 = vrot.lane.b32.xlu1 %v673_v14, %s1791_s20 }
 0x110   : > { %986 = vperm.xlu0 %1608, %v234_v20  }
 0x112   : > { %v2093_v29 = vpop.permute.xlu1 %366  ;;  %v2097_v30 = vpop.permute.xlu0 %368 }
 0x113   : > { %448 = vrot.lane.b32.xlu1 %v429_v21, %s1789_s16 }
 0x114   : > { %528 = vrot.lane.b32.xlu0 %v509_v25, %s1788_s15 }
 0x116   : > { %v2099_v31 = vpop.permute.xlu1 %370  ;;  %v2101_v32 = vpop.permute.xlu0 %372 }
 0x117   : > { %612 = vrot.lane.b32.xlu1 %v591_v27, %s1790_s17 }
 0x118   : > { %692 = vrot.lane.b32.xlu0 %v671_v28, %s1791_s20 }
 0x11a   : > { %v2103_v33 = vpop.permute.xlu1 %374 }
 0x123   : > { %v644_v34 = vpop.permute.xlu0 %643 }
 0x124   : > { %v668_v9 = vmul.f32 %v1939_v17, %v644_v34 }
 0x127   : > { %v476_v35 = vpop.permute.xlu1 %475 }
 0x128   : > { %v744_v37 = vpop.permute.xlu0 %743  ;;  %v506_v2 = vmul.f32 %v1939_v17, %v476_v35 }
 0x129   : > { %v753_v38 = vmul.f32 %v1939_v17, %v744_v37 }
 0x12b   : > { %776 = vrot.lane.b32.xlu1 %v753_v38, %s1792_s21  ;;  %v480_v39 = vpop.permute.xlu1 %479 }
 0x12c   : > { %v732_v40 = vpop.permute.xlu0 %731  ;;  %v507_v12 = vmul.f32 %v1939_v17, %v480_v39 }
 0x12d   : > { %v750_v36 = vmul.f32 %v1939_v17, %v732_v40 }
 0x12f   : > { %991 = vperm.xlu1 %1609, %v235_v41   ;;  %v230_v41 = vld [vmem:[%s2416_s2 + $0x10] sm:$0xff] }
 0x130   : > { %v2110_v42 = vpop.permute.xlu0 %723  ;;  %v648_v43 = vpop.permute.xlu1 %647 }
 0x131   : > { %v669_v14 = vmul.f32 %v1939_v17, %v648_v43  ;;  %v748_v28 = vmul.f32 %v1939_v17, %v2110_v42 }
 0x133   : > { %526 = vrot.lane.b32.xlu1 %v508_v44, %s1788_s15 }
 0x134   : > { %v2115_v45 = vpop.permute.xlu0 %376 }
 0x135   : > { %v812_v47 = vpop.permute.xlu1 %811 }
 0x136   : > { %v830_v13 = vmul.f32 %v1939_v17, %v812_v47 }
 0x137   : > { %690 = vrot.lane.b32.xlu1 %v670_v46, %s1791_s20 }
 0x138   : > { %v2119_v48 = vpop.permute.xlu0 %719 }
 0x13a   : > { %v556_v51 = vpop.permute.xlu1 %555 }
 0x13b   : > { %854 = vrot.lane.b32.xlu1 %v832_v50, %s1793_s26  ;;  %v586_v20 = vmul.f32 %v1939_v17, %v556_v51  ;;  %v231_v50 = vld [vmem:[%s2416_s2 + $0x18] sm:$0xff] }
 0x13d   : > { %v824_v53 = vpop.permute.xlu0 %823 }
 0x13e   : > { %v833_v54 = vmul.f32 %v1939_v17, %v824_v53  ;;  %v560_v55 = vpop.permute.xlu1 %559 }
 0x13f   : > { %442 = vrot.lane.b32.xlu1 %v426_v52, %s1789_s16  ;;  %v587_v34 = vmul.f32 %v1939_v17, %v560_v55 }
 0x140   : > { %856 = vrot.lane.b32.xlu0 %v833_v54, %s1793_s26 }
 0x141   : > { %v816_v57 = vpop.permute.xlu0 %815 }
 0x142   : > { %v831_v21 = vmul.f32 %v1939_v17, %v816_v57 }
 0x143   : > { %606 = vrot.lane.b32.xlu1 %v588_v56, %s1790_s17  ;;  %v728_v59 = vpop.permute.xlu1 %727 }
 0x144   : > { %444 = vrot.lane.b32.xlu0 %v427_v58, %s1789_s16  ;;  %v749_v39 = vmul.f32 %v1939_v17, %v728_v59 }
 0x145   : > { %v2136_v60 = vpop.permute.xlu0 %803 }
 0x146   : > { %v828_v52 = vmul.f32 %v1939_v17, %v2136_v60 }
 0x147   : > { %770 = vrot.lane.b32.xlu1 %v750_v36, %s1792_s21 }
 0x148   : > { %608 = vrot.lane.b32.xlu0 %v589_v61, %s1790_s17  ;;  %v892_v62 = vpop.permute.xlu1 %891  ;;  %v747_v61 = vmul.f32 %v1939_v17, %v2119_v48 }
 0x149   : > { %v2144_v63 = vpop.permute.xlu0 %795  ;;  %v910_v38 = vmul.f32 %v1939_v17, %v892_v62 }
 0x14b   : > { %934 = vrot.lane.b32.xlu1 %v912_v49, %s1794_s27  ;;  %v228_v49 = vld [vmem:[%s2416_s2] sm:$0xff] }
 0x14c   : > { %772 = vrot.lane.b32.xlu0 %v751_v0, %s1792_s21 }
 0x14d   : > { %v636_v3 = vpop.permute.xlu1 %635 }
 0x14e   : > { %v904_v4 = vpop.permute.xlu0 %903  ;;  %v666_v46 = vmul.f32 %v1939_v17, %v636_v3 }
 0x14f   : > { %v913_v5 = vmul.f32 %v1939_v17, %v904_v4  ;;  %976 = vperm.xlu1 %1609, %v232_v1   ;;  %v826_v4 = vmul.f32 %v1939_v17, %v2144_v63 }
 0x151   : > { %936 = vrot.lane.b32.xlu0 %v913_v5, %s1794_s27  ;;  %v640_v6 = vpop.permute.xlu1 %639  ;;  %v229_v5 = vld [vmem:[%s2416_s2 + $0x8] sm:$0xff] }
 0x152   : > { %v896_v7 = vpop.permute.xlu0 %895  ;;  %v667_v54 = vmul.f32 %v1939_v17, %v640_v6 }
 0x153   : > { %522 = vrot.lane.b32.xlu1 %v506_v2, %s1788_s15  ;;  %v911_v43 = vmul.f32 %v1939_v17, %v896_v7 }
 0x155   : > { %981 = vperm.xlu0 %1608, %v233_v8  }
 0x156   : > { %v2161_v10 = vpop.permute.xlu0 %879  ;;  %v808_v11 = vpop.permute.xlu1 %807 }
 0x157   : > { %686 = vrot.lane.b32.xlu1 %v668_v9, %s1791_s20  ;;  %v829_v58 = vmul.f32 %v1939_v17, %v808_v11  ;;  %v301_v11 = vmul.f32 %v1939_v17, %v1941_v18 }
 0x159   : > { %524 = vrot.lane.b32.xlu0 %v507_v12, %s1788_s15  ;;  %v907_v12 = vmul.f32 %v1939_v17, %v2161_v10 }
 0x15b   : > { %v2168_v15 = vpop.permute.xlu0 %260  ;;  %850 = vrot.lane.b32.xlu1 %v830_v13, %s1793_s26  ;;  %v716_v19 = vpop.permute.xlu1 %715 }
 0x15c   : > { %v746_v56 = vmul.f32 %v1939_v17, %v716_v19 }
 0x15d   : > { %688 = vrot.lane.b32.xlu0 %v669_v14, %s1791_s20  ;;  %v389_v14 = vadd.f32 %v2097_v30, %v301_v11 }
 0x15f   : > { %v2174_v25 = vpop.permute.xlu0 %265  ;;  %602 = vrot.lane.b32.xlu1 %v586_v20, %s1790_s17 }
 0x160   : > { %v884_v27 = vpop.permute.xlu1 %883 }
 0x161   : > { %852 = vrot.lane.b32.xlu0 %v831_v21, %s1793_s26  ;;  %v908_v36 = vmul.f32 %v1939_v17, %v884_v27 }
 0x163   : > { %v2181_v35 = vpop.permute.xlu0 %280  ;;  %766 = vrot.lane.b32.xlu1 %v748_v28, %s1792_s21 }
 0x164   : > { %v888_v37 = vpop.permute.xlu1 %887 }
 0x165   : > { %604 = vrot.lane.b32.xlu0 %v587_v34, %s1790_s17  ;;  %v909_v1 = vmul.f32 %v1939_v17, %v888_v37  ;;  %v300_v37 = vmul.f32 %v1939_v17, %v1932_v16 }
 0x167   : > { %v2187_v40 = vpop.permute.xlu0 %290  ;;  %930 = vrot.lane.b32.xlu1 %v910_v38, %s1794_s27  ;;  %v388_v38 = vadd.f32 %v2093_v29, %v300_v37 }
 0x169   : > { %768 = vrot.lane.b32.xlu0 %v749_v39, %s1792_s21  ;;  %v800_v42 = vpop.permute.xlu1 %799 }
 0x16a   : > { %v827_v8 = vmul.f32 %v1939_v17, %v800_v42  ;;  %v304_v42 = vmul.f32 %v1939_v17, %v2187_v40 }
 0x16b   : > { %v2195_v44 = vpop.permute.xlu0 %534  ;;  %966 = vperm.xlu1 %1609, %v230_v41  }
 0x16d   : > { %932 = vrot.lane.b32.xlu0 %v911_v43, %s1794_s27 }
 0x16e   : > { %v876_v47 = vpop.permute.xlu1 %875 }
 0x16f   : > { %v2202_v51 = vpop.permute.xlu0 %450  ;;  %682 = vrot.lane.b32.xlu1 %v666_v46, %s1791_s20  ;;  %v906_v2 = vmul.f32 %v1939_v17, %v876_v47  ;;  %v305_v47 = vmul.f32 %v1939_v17, %v1949_v23 }
 0x171   : > { %971 = vperm.xlu0 %1608, %v231_v50   ;;  %v392_v50 = vadd.f32 %v2103_v33, %v304_v42  ;;  %v393_v16 = vadd.f32 %v2115_v45, %v305_v47 }
 0x172   : > { %v455_v53 = vpop.permute.xlu1 %454 }
 0x173   : > { %v2208_v55 = vpop.permute.xlu0 %614  ;;  %846 = vrot.lane.b32.xlu1 %v828_v52, %s1793_s26 }
 0x175   : > { %684 = vrot.lane.b32.xlu0 %v667_v54, %s1791_s20  ;;  %v472_v54 = vadd.f32 %v455_v53, %v392_v50 }
 0x176   : > { %v457_v57 = vpop.permute.xlu1 %456 }
 0x177   : > { %v2214_v59 = vpop.permute.xlu0 %530  ;;  %762 = vrot.lane.b32.xlu1 %v746_v56, %s1792_s21  ;;  %v473_v56 = vadd.f32 %v457_v57, %v393_v16  ;;  %v552_v40 = vadd.f32 %v2195_v44, %v472_v54 }
 0x179   : > { %848 = vrot.lane.b32.xlu0 %v829_v58, %s1793_s26  ;;  %v632_v33 = vadd.f32 %v2208_v55, %v552_v40 }
 0x17a   : > { %v537_v60 = vpop.permute.xlu1 %536 }
 0x17b   : > { %v695_v62 = vpop.permute.xlu0 %694  ;;  %926 = vrot.lane.b32.xlu1 %v908_v36, %s1794_s27  ;;  %v553_v58 = vadd.f32 %v537_v60, %v473_v56 }
 0x17c   : > { %v712_v45 = vadd.f32 %v695_v62, %v632_v33 }
 0x17d   : > { %764 = vrot.lane.b32.xlu0 %v747_v61, %s1792_s21 }
 0x17e   : > { %v2226_v0 = vpop.permute.xlu1 %452 }
 0x17f   : > { %v447_v3 = vpop.permute.xlu0 %446  ;;  %956 = vperm.xlu1 %1609, %v228_v49  }
 0x180   : > { %v468_v10 = vadd.f32 %v447_v3, %v388_v38 }
 0x181   : > { %928 = vrot.lane.b32.xlu0 %v909_v1, %s1794_s27 }
 0x182   : > { %v617_v48 = vpop.permute.xlu1 %616 }
 0x183   : > { %v2236_v6 = vpop.permute.xlu0 %610  ;;  %842 = vrot.lane.b32.xlu1 %v826_v4, %s1793_s26  ;;  %v633_v49 = vadd.f32 %v617_v48, %v553_v58 }
 0x185   : > { %961 = vperm.xlu0 %1608, %v229_v5  }
 0x186   : > { %v2239_v7 = vpop.permute.xlu1 %532 }
 0x187   : > { %v775_v9 = vpop.permute.xlu0 %774  ;;  %922 = vrot.lane.b32.xlu1 %v906_v2, %s1794_s27 }
 0x189   : > { %844 = vrot.lane.b32.xlu0 %v827_v8, %s1793_s26  ;;  %v792_v8 = vadd.f32 %v775_v9, %v712_v45 }
 0x18a   : > { %v697_v63 = vpop.permute.xlu1 %696 }
 0x18b   : > { %v987_v13 = vpop.permute.xlu0 %986  ;;  %v713_v1 = vadd.f32 %v697_v63, %v633_v49 }
 0x18d   : > { %924 = vrot.lane.b32.xlu0 %v907_v12, %s1794_s27 }
 0x18e   : > { %v449_v19 = vpop.permute.xlu1 %448 }
 0x18f   : > { %v469_v20 = vadd.f32 %v449_v19, %v389_v14  ;;  %v529_v21 = vpop.permute.xlu0 %528 }
 0x191   : > { %v2250_v27 = vadd.f32 %v529_v21, %v469_v20 }
 0x192   : > { %v2252_v28 = vpop.permute.xlu1 %612 }
 0x193   : > { %v2257_v39 = vpop.permute.xlu0 %692 }
 0x19d   : > { %v777_v34 = vpop.permute.xlu1 %776 }
 0x19e   : > { %v793_v4 = vadd.f32 %v777_v34, %v713_v1 }
 0x1aa   : > { %v992_v18 = vpop.permute.xlu1 %991 }
 0x1ae   : > { %v527_v30 = vpop.permute.xlu1 %526 }
 0x1af   : > { %v2259_v41 = vadd.f32 %v527_v30, %v468_v10 }
 0x1b2   : > { %v857_v43 = vpop.permute.xlu0 %856  ;;  %v691_v46 = vpop.permute.xlu1 %690 }
 0x1b3   : > { %v873_v5 = vadd.f32 %v857_v43, %v793_v4 }
 0x1b6   : > { %v2267_v52 = vpop.permute.xlu0 %444  ;;  %v855_v29 = vpop.permute.xlu1 %854 }
 0x1b7   : > { %v872_v60 = vadd.f32 %v855_v29, %v792_v8 }
 0x1ba   : > { %v2269_v36 = vpop.permute.xlu0 %608  ;;  %v2271_v61 = vpop.permute.xlu1 %442 }
 0x1be   : > { %v773_v3 = vpop.permute.xlu0 %772  ;;  %v607_v23 = vpop.permute.xlu1 %606 }
 0x1c2   : > { %v771_v2 = vpop.permute.xlu1 %770 }
 0x1c3   : > { %v937_v53 = vpop.permute.xlu0 %936 }
 0x1c4   : > { %v953_v57 = vadd.f32 %v937_v53, %v873_v5 }
 0x1c6   : > { %v935_v11 = vpop.permute.xlu1 %934  ;;  %v1001_v12 = vadd.f32 %v992_v18, %v953_v57  ;;  %v303_v18 = vmul.f32 %v1939_v17, %v1946_v22 }
 0x1c7   : > { %v952_v14 = vadd.f32 %v935_v11, %v872_v60  ;;  %v298_v11 = vmul.f32 %v1939_v17, %v2168_v15 }
 0x1c8   : > { %v1009_v44 = vmax.f32 %v1001_v12, 0.0  ;;  %v391_v30 = vadd.f32 %v2101_v32, %v303_v18 }
 0x1c9   : > { %v1000_v19 = vadd.f32 %v987_v13, %v952_v14  ;;  %v302_v13 = vmul.f32 %v1939_v17, %v2181_v35 }
 0x1ca   : > { %v977_v20 = vpop.permute.xlu1 %976  ;;  %v471_v50 = vadd.f32 %v2226_v0, %v391_v30 }
 0x1cb   : > { %v1008_v48 = vmax.f32 %v1000_v19, 0.0  ;;  %v390_v38 = vadd.f32 %v2099_v31, %v302_v13  ;;  %v629_v19 = vadd.f32 %v2269_v36, %v2250_v27 }
 0x1cc   : > { %v551_v29 = vadd.f32 %v2239_v7, %v471_v50 }
 0x1cd   : > { %v2275_v63 = vpack.i.bf16 %v1009_v44, %v1008_v48  ;;  %v2283_v55 = vpack.c.bf16 %v1009_v44, %v1008_v48  ;;  %v470_v42 = vadd.f32 %v2202_v51, %v390_v38  ;;  %v386_v44 = vadd.f32 %v2083_v24, %v298_v11 }
 0x1ce   : > { %v2277_v21 = vpop.permute.xlu1 %522  ;;  %v631_v22 = vadd.f32 %v2252_v28, %v551_v29 }
 0x1cf   : > { %1616 = vrot.lane.b32.xlu0 %v2275_v63, %s1787_s14  ;;  %1611 = vrot.lane.b32.xlu1 %v2275_v63, %s1788_s15  ;;  %v550_v47 = vadd.f32 %v2214_v59, %v470_v42 }
 0x1d0   : > { %v982_v62 = vpop.permute.xlu0 %981  ;;  %v711_v32 = vadd.f32 %v2257_v39, %v631_v22  ;;  %v628_v39 = vadd.f32 %v607_v23, %v2259_v41  ;;  %v299_v41 = vmul.f32 %v1939_v17, %v2174_v25 }
 0x1d1   : > { %v630_v35 = vadd.f32 %v2236_v6, %v550_v47 }
 0x1d2   : > { %v687_v9 = vpop.permute.xlu1 %686  ;;  %v791_v1 = vadd.f32 %v773_v3, %v711_v32  ;;  %v387_v15 = vadd.f32 %v2086_v26, %v299_v41 }
 0x1d3   : > { %v710_v56 = vadd.f32 %v691_v46, %v630_v35  ;;  %v708_v12 = vadd.f32 %v687_v9, %v628_v39 }
 0x1d4   : > { %v2287_v34 = vpop.permute.xlu0 %524  ;;  %v467_v36 = vadd.f32 %v2267_v52, %v387_v15 }
 0x1d5   : > { %v790_v58 = vadd.f32 %v771_v2, %v710_v56 }
 0x1d6   : > { %v851_v37 = vpop.permute.xlu1 %850  ;;  %v547_v24 = vadd.f32 %v2287_v34, %v467_v36 }
 0x1d7   : > { %v870_v51 = vadd.f32 %v851_v37, %v790_v58  ;;  %v466_v37 = vadd.f32 %v2271_v61, %v386_v44 }
 0x1d8   : > { %v689_v10 = vpop.permute.xlu0 %688 }
 0x1d9   : > { %v709_v48 = vadd.f32 %v689_v10, %v629_v19  ;;  %v546_v30 = vadd.f32 %v2277_v21, %v466_v37 }
 0x1da   : > { %v603_v43 = vpop.permute.xlu1 %602 }
 0x1db   : > { %v626_v17 = vadd.f32 %v603_v43, %v546_v30 }
 0x1dc   : > { %v853_v16 = vpop.permute.xlu0 %852 }
 0x1dd   : > { %v871_v0 = vadd.f32 %v853_v16, %v791_v1 }
 0x1de   : > { %v767_v54 = vpop.permute.xlu1 %766 }
 0x1e0   : > { %v605_v31 = vpop.permute.xlu0 %604 }
 0x1e1   : > { %v627_v61 = vadd.f32 %v605_v31, %v547_v24 }
 0x1e2   : > { %v931_v40 = vpop.permute.xlu1 %930 }
 0x1e3   : > { %v950_v59 = vadd.f32 %v931_v40, %v870_v51 }
 0x1e4   : > { %v769_v49 = vpop.permute.xlu0 %768 }
 0x1e5   : > { %v998_v45 = vadd.f32 %v977_v20, %v950_v59  ;;  %v788_v20 = vadd.f32 %v767_v54, %v708_v12  ;;  %v789_v18 = vadd.f32 %v769_v49, %v709_v48 }
 0x1e6   : > { %v967_v33 = vpop.permute.xlu1 %966 }
 0x1e7   : > { %v1006_v53 = vmax.f32 %v998_v45, 0.0  ;;  %v237_v45 = vld [vmem:[%s2417_s3 + $0x8] sm:$0xff] }
 0x1e8   : > { %v933_v4 = vpop.permute.xlu0 %932 }
 0x1e9   : > { %v951_v6 = vadd.f32 %v933_v4, %v871_v0 }
 0x1ea   : > { %v683_v5 = vpop.permute.xlu1 %682 }
 0x1eb   : > { %v999_v7 = vadd.f32 %v982_v62, %v951_v6  ;;  %v706_v50 = vadd.f32 %v683_v5, %v626_v17  ;;  %v242_v6 = vld [vmem:[%s2417_s3 + $0x30] sm:$0xff] }
 0x1ec   : > { %v972_v8 = vpop.permute.xlu0 %971  ;;  %v247_v5 = vpack.c.bf16 %v242_v6, %v237_v45 }
 0x1ed   : > { %v1007_v28 = vmax.f32 %v999_v7, 0.0  ;;  %v239_v7 = vld [vmem:[%s2417_s3 + $0x18] sm:$0xff] }
 0x1ee   : > { %v847_v46 = vpop.permute.xlu1 %846  ;;  %1294 = vmatprep.mubr.bf16.mxu0 %v247_v5 }
 0x1ef   : > { %v2300_v57 = vpack.i.bf16 %v1007_v28, %v1006_v53  ;;  %v2307_v3 = vpack.c.bf16 %v1007_v28, %v1006_v53  ;;  %v868_v62 = vadd.f32 %v847_v46, %v788_v20  ;;  %v1246_v28 = vld [vmem:[%s2418_s4] sm:$0xff] }
 0x1f0   : > { %v685_v2 = vpop.permute.xlu0 %684 }
 0x1f1   : > { %1626 = vrot.lane.b32.xlu0 %v2300_v57, %s1787_s14  ;;  %1621 = vrot.lane.b32.xlu1 %v2300_v57, %s1788_s15  ;;  %v707_v22 = vadd.f32 %v685_v2, %v627_v61 }
 0x1f2   : > { %v763_v60 = vpop.permute.xlu1 %762 }
 0x1f3   : > { %v786_v29 = vadd.f32 %v763_v60, %v706_v50 }
 0x1f4   : > { %v849_v14 = vpop.permute.xlu0 %848 }
 0x1f5   : > { %v869_v27 = vadd.f32 %v849_v14, %v789_v18 }
 0x1f6   : > { %v927_v23 = vpop.permute.xlu1 %926 }
 0x1f7   : > { %v948_v38 = vadd.f32 %v927_v23, %v868_v62 }
 0x1f8   : > { %v765_v13 = vpop.permute.xlu0 %764 }
 0x1f9   : > { %v996_v25 = vadd.f32 %v967_v33, %v948_v38  ;;  %v787_v52 = vadd.f32 %v765_v13, %v707_v22 }
 0x1fa   : > { %v957_v9 = vpop.permute.xlu1 %956 }
 0x1fb   : > { %v1004_v54 = vmax.f32 %v996_v25, 0.0 }
 0x1fc   : > { %v929_v42 = vpop.permute.xlu0 %928 }
 0x1fd   : > { %v949_v47 = vadd.f32 %v929_v42, %v869_v27 }
 0x1fe   : > { %v843_v10 = vpop.permute.xlu1 %842 }
 0x1ff   : > { %v997_v16 = vadd.f32 %v972_v8, %v949_v47  ;;  %v866_v21 = vadd.f32 %v843_v10, %v786_v29  ;;  %v244_v8 = vld [vmem:[%s2417_s3 + $0x40] sm:$0xff] }
 0x200   : > { %v962_v35 = vpop.permute.xlu0 %961  ;;  %v249_v53 = vpack.c.bf16 %v244_v8, %v239_v7 }
 0x201   : > { %v1005_v26 = vmax.f32 %v997_v16, 0.0 }
 0x202   : > { %v923_v56 = vpop.permute.xlu1 %922  ;;  %1335 = vmatprep.mubr.bf16.mxu1 %v249_v53 }
 0x203   : > { %v1635_v58 = vpack.i.bf16 %v1005_v26, %v1004_v54  ;;  %v946_v32 = vadd.f32 %v923_v56, %v866_v21  ;;  %v2323_v34 = vpack.c.bf16 %v1005_v26, %v1004_v54 }
 0x204   : > { %v845_v40 = vpop.permute.xlu0 %844 }
 0x205   : > { %1636 = vrot.lane.b32.xlu0 %v1635_v58, %s1787_s14  ;;  %1631 = vrot.lane.b32.xlu1 %v1635_v58, %s1788_s15  ;;  %v867_v43 = vadd.f32 %v845_v40, %v787_v52  ;;  %v994_v31 = vadd.f32 %v957_v9, %v946_v32 }
 0x207   : > { %v1002_v59 = vmax.f32 %v994_v31, 0.0 }
 0x208   : > { %v925_v51 = vpop.permute.xlu0 %924 }
 0x209   : > { %v947_v49 = vadd.f32 %v925_v51, %v867_v43  ;;  %1646 = vrot.lane.b32.xlu0 %v2275_v63, %s1791_s20  ;;  %1641 = vrot.lane.b32.xlu1 %v2275_v63, %s1793_s26 }
 0x20b   : > { %v995_v1 = vadd.f32 %v962_v35, %v947_v49 }
 0x20d   : > { %v1003_v33 = vmax.f32 %v995_v1, 0.0 }
 0x20f   : > { %v1655_v0 = vpack.i.bf16 %v1003_v33, %v1002_v59  ;;  %v2331_v4 = vpack.c.bf16 %v1003_v33, %v1002_v59 }
 0x211   : > { %1656 = vrot.lane.b32.xlu0 %v1655_v0, %s1787_s14  ;;  %1651 = vrot.lane.b32.xlu1 %v1655_v0, %s1788_s15 }
 0x215   : > { %1666 = vrot.lane.b32.xlu0 %v2300_v57, %s1791_s20  ;;  %1661 = vrot.lane.b32.xlu1 %v2300_v57, %s1793_s26 }
 0x219   : > { %1676 = vrot.lane.b32.xlu0 %v1635_v58, %s1793_s26  ;;  %1671 = vrot.lane.b32.xlu1 %v2275_v63, %s1789_s16 }
 0x21d   : > { %1686 = vrot.lane.b32.xlu0 %v2300_v57, %s1789_s16  ;;  %1681 = vrot.lane.b32.xlu1 %v1635_v58, %s1791_s20 }
 0x221   : > { %1696 = vrot.lane.b32.xlu0 %v1655_v0, %s1791_s20  ;;  %1691 = vrot.lane.b32.xlu1 %v1655_v0, %s1793_s26  ;;  %s1480_s20 = sshll.u32 %s2421_s19, 4 }
 0x225   : > { %1706 = vrot.lane.b32.xlu0 %v2275_v63, %s1792_s21  ;;  %1701 = vrot.lane.b32.xlu1 %v1635_v58, %s1789_s16 }
 0x229   : > { %1716 = vrot.lane.b32.xlu0 %v1655_v0, %s1789_s16  ;;  %1711 = vrot.lane.b32.xlu1 %v2275_v63, %s1790_s17  ;;  %s218_s16 = scalar_lea.vmem %s2419_s5, %s1480_s20 }
 0x22d   : > { %1726 = vrot.lane.b32.xlu0 %v2300_v57, %s1790_s17  ;;  %1721 = vrot.lane.b32.xlu1 %v2300_v57, %s1792_s21 }
 0x231   : > { %1736 = vrot.lane.b32.xlu0 %v1635_v58, %s1792_s21  ;;  %1731 = vrot.lane.b32.xlu1 %v2275_v63, %s1794_s27  ;;  %v1247_v63 = vld [vmem:[%s2418_s4 + $0x8] sm:$0xff] }
 0x235   : > { %1746 = vrot.lane.b32.xlu0 %v2300_v57, %s1794_s27  ;;  %1741 = vrot.lane.b32.xlu1 %v1635_v58, %s1790_s17 }
 0x239   : > { %1756 = vrot.lane.b32.xlu0 %v1655_v0, %s1790_s17  ;;  %1751 = vrot.lane.b32.xlu1 %v1655_v0, %s1792_s21 }
 0x23d   : > { %1766 = vrot.lane.b32.xlu0 %v1655_v0, %s1794_s27  ;;  %1761 = vrot.lane.b32.xlu1 %v1635_v58, %s1794_s27 }
 0x241   : > { %v1617_v46 = vpop.permute.xlu0 %1616  ;;  %v1612_v57 = vpop.permute.xlu1 %1611  ;;  %1255 = vperm.xlu0 %1608, %v1247_v63   ;;  %1250 = vperm.xlu1 %1609, %v1246_v28  }
 0x242   : > { %v1619_v2 = vunpack.i.h.bf16 %v1617_v46  ;;  %v1618_v39 = vunpack.i.l.bf16 %v1617_v46  ;;  %v1614_v60 = vunpack.i.h.bf16 %v1612_v57  ;;  %v1613_v11 = vunpack.i.l.bf16 %v1612_v57 }
 0x244   : > { %v1225_v12 = vpack.c.bf16 %v1614_v60, %v1613_v11  ;;  %v1217_v14 = vpack.c.bf16 %v1619_v2, %v1618_v39 }
 0x246   : > { %1481 = vmatprep.subr.bf16.mxu0 %v1225_v12 }
 0x247   : > { %1482 = vmatpush3.bf16.msra.mxu0 %v1217_v14 }
 0x263   : > { %v1627_v19 = vpop.permute.xlu0 %1626  ;;  %v1622_v20 = vpop.permute.xlu1 %1621 }
 0x264   : > { %v1629_v41 = vunpack.i.h.bf16 %v1627_v19  ;;  %v1628_v23 = vunpack.i.l.bf16 %v1627_v19  ;;  %v1624_v44 = vunpack.i.h.bf16 %v1622_v20  ;;  %v1623_v48 = vunpack.i.l.bf16 %v1622_v20 }
 0x266   : > { %v1216_v62 = vpack.c.bf16 %v1629_v41, %v1628_v23  ;;  %v1224_v13 = vpack.c.bf16 %v1624_v44, %v1623_v48 }
 0x268   : > { %1483 = vmatprep.subr.bf16.mxu0 %v1224_v13 }
 0x269   : > { %1484 = vmatpush3.bf16.msra.mxu0 %v1216_v62 }
 0x277   : > { %v1637_v37 = vpop.permute.xlu0 %1636  ;;  %v1632_v18 = vpop.permute.xlu1 %1631 }
 0x278   : > { %v1639_v38 = vunpack.i.h.bf16 %v1637_v37  ;;  %v1638_v15 = vunpack.i.l.bf16 %v1637_v37  ;;  %v1634_v9 = vunpack.i.h.bf16 %v1632_v18  ;;  %v1633_v30 = vunpack.i.l.bf16 %v1632_v18 }
 0x27a   : > { %v1215_v27 = vpack.c.bf16 %v1639_v38, %v1638_v15  ;;  %v1223_v36 = vpack.c.bf16 %v1634_v9, %v1633_v30 }
 0x27b   : > { %v1647_v42 = vpop.permute.xlu0 %1646  ;;  %v1642_v17 = vpop.permute.xlu1 %1641 }
 0x27c   : > { %v1649_v25 = vunpack.i.h.bf16 %v1647_v42  ;;  %v1648_v47 = vunpack.i.l.bf16 %v1647_v42  ;;  %v1644_v24 = vunpack.i.h.bf16 %v1642_v17  ;;  %v1643_v10 = vunpack.i.l.bf16 %v1642_v17  ;;  %1485 = vmatprep.subr.bf16.mxu0 %v1223_v36  ;;  %v241_v17 = vld [vmem:[%s2417_s3 + $0x28] sm:$0xff] }
 0x27d   : > { %1486 = vmatpush3.bf16.msra.mxu0 %v1215_v27 }
 0x27e   : > { %v1241_v50 = vpack.c.bf16 %v1644_v24, %v1643_v10  ;;  %v1233_v16 = vpack.c.bf16 %v1649_v25, %v1648_v47 }
 0x280   : > { %1503 = vmatprep.subr.bf16.mxu1 %v1241_v50 }
 0x281   : > { %1504 = vmatpush3.bf16.msra.mxu1 %v1233_v16 }
 0x283   : > { %v1657_v61 = vpop.permute.xlu0 %1656  ;;  %v1652_v35 = vpop.permute.xlu1 %1651 }
 0x284   : > { %v1659_v29 = vunpack.i.h.bf16 %v1657_v61  ;;  %v1658_v54 = vunpack.i.l.bf16 %v1657_v61  ;;  %v1654_v26 = vunpack.i.h.bf16 %v1652_v35  ;;  %v1653_v22 = vunpack.i.l.bf16 %v1652_v35 }
 0x286   : > { %v1214_v56 = vpack.c.bf16 %v1659_v29, %v1658_v54  ;;  %v1222_v21 = vpack.c.bf16 %v1654_v26, %v1653_v22  ;;  %v1795_v22 = vmov 0.0  }
 0x287   : > { %v1667_v58 = vpop.permute.xlu0 %1666  ;;  %v1662_v40 = vpop.permute.xlu1 %1661 }
 0x288   : > { %v1669_v52 = vunpack.i.h.bf16 %v1667_v58  ;;  %v1668_v32 = vunpack.i.l.bf16 %v1667_v58  ;;  %v1664_v43 = vunpack.i.h.bf16 %v1662_v40  ;;  %v1663_v51 = vunpack.i.l.bf16 %v1662_v40  ;;  %1487 = vmatprep.subr.bf16.mxu0 %v1222_v21 }
 0x289   : > { %1488 = vmatpush3.bf16.msra.mxu0 %v1214_v56 }
 0x28a   : > { %v1232_v31 = vpack.c.bf16 %v1669_v52, %v1668_v32  ;;  %v1240_v49 = vpack.c.bf16 %v1664_v43, %v1663_v51 }
 0x28b   : > { %v1677_v1 = vpop.permute.xlu0 %1676  ;;  %v1672_v59 = vpop.permute.xlu1 %1671 }
 0x28c   : > { %v1679_v33 = vunpack.i.h.bf16 %v1677_v1  ;;  %v1678_v0 = vunpack.i.l.bf16 %v1677_v1  ;;  %v1674_v45 = vunpack.i.h.bf16 %v1672_v59  ;;  %v1673_v6 = vunpack.i.l.bf16 %v1672_v59  ;;  %1505 = vmatprep.subr.bf16.mxu1 %v1240_v49 }
 0x28d   : > { %1506 = vmatpush3.bf16.msra.mxu1 %v1232_v31 }
 0x28e   : > { %v1239_v5 = vpack.c.bf16 %v1679_v33, %v1678_v0  ;;  %v1221_v7 = vpack.c.bf16 %v1674_v45, %v1673_v6 }
 0x28f   : > { %v1687_v8 = vpop.permute.xlu0 %1686  ;;  %v1682_v53 = vpop.permute.xlu1 %1681 }
 0x290   : > { %v1689_v63 = vunpack.i.h.bf16 %v1687_v8  ;;  %v1688_v28 = vunpack.i.l.bf16 %v1687_v8  ;;  %v1684_v46 = vunpack.i.h.bf16 %v1682_v53  ;;  %v1683_v57 = vunpack.i.l.bf16 %v1682_v53  ;;  %1489 = vmatprep.subr.bf16.mxu0 %v1221_v7  ;;  %1507 = vmatprep.subr.bf16.mxu1 %v1239_v5 }
 0x291   : > { %1490 = vmatpush3.bf16.msra.mxu0 %v2283_v55 }
 0x292   : > { %v1220_v2 = vpack.c.bf16 %v1689_v63, %v1688_v28  ;;  %v1231_v39 = vpack.c.bf16 %v1684_v46, %v1683_v57  ;;  %v238_v63 = vld [vmem:[%s2417_s3 + $0x10] sm:$0xff]  ;;  %v243_v28 = vld [vmem:[%s2417_s3 + $0x38] sm:$0xff] }
 0x293   : > { %v1697_v60 = vpop.permute.xlu0 %1696  ;;  %v1692_v11 = vpop.permute.xlu1 %1691 }
 0x294   : > { %v1699_v12 = vunpack.i.h.bf16 %v1697_v60  ;;  %v1698_v14 = vunpack.i.l.bf16 %v1697_v60  ;;  %v1694_v19 = vunpack.i.h.bf16 %v1692_v11  ;;  %v1693_v20 = vunpack.i.l.bf16 %v1692_v11  ;;  %1491 = vmatprep.subr.bf16.mxu0 %v1220_v2  ;;  %1508 = vmatpush3.bf16.msra.mxu1 %v1231_v39 }
 0x295   : > { %1492 = vmatpush3.bf16.msra.mxu0 %v2307_v3  ;;  %v236_v3 = vld [vmem:[%s2417_s3] sm:$0xff] }
 0x296   : > { %v1230_v41 = vpack.c.bf16 %v1699_v12, %v1698_v14  ;;  %v1238_v23 = vpack.c.bf16 %v1694_v19, %v1693_v20  ;;  %v246_v50 = vpack.c.bf16 %v241_v17, %v236_v3  ;;  %v248_v12 = vpack.c.bf16 %v243_v28, %v238_v63 }
 0x297   : > { %v1707_v44 = vpop.permute.xlu0 %1706  ;;  %v1702_v48 = vpop.permute.xlu1 %1701 }
 0x298   : > { %v1709_v62 = vunpack.i.h.bf16 %v1707_v44  ;;  %v1708_v13 = vunpack.i.l.bf16 %v1707_v44  ;;  %v1704_v37 = vunpack.i.h.bf16 %v1702_v48  ;;  %v1703_v55 = vunpack.i.l.bf16 %v1702_v48  ;;  %1509 = vmatprep.subr.bf16.mxu1 %v1238_v23  ;;  %v245_v23 = vld [vmem:[%s2417_s3 + $0x48] sm:$0xff] }
 0x299   : > { %1510 = vmatpush3.bf16.msra.mxu1 %v1230_v41  ;;  %v240_v41 = vld [vmem:[%s2417_s3 + $0x20] sm:$0xff] }
 0x29a   : > { %v1237_v18 = vpack.c.bf16 %v1709_v62, %v1708_v13  ;;  %v1219_v38 = vpack.c.bf16 %v1704_v37, %v1703_v55  ;;  %v250_v48 = vpack.c.bf16 %v245_v23, %v240_v41 }
 0x29b   : > { %v1717_v15 = vpop.permute.xlu0 %1716  ;;  %v1712_v9 = vpop.permute.xlu1 %1711 }
 0x29c   : > { %v1719_v30 = vunpack.i.h.bf16 %v1717_v15  ;;  %v1718_v27 = vunpack.i.l.bf16 %v1717_v15  ;;  %v1714_v36 = vunpack.i.h.bf16 %v1712_v9  ;;  %v1713_v42 = vunpack.i.l.bf16 %v1712_v9  ;;  %1493 = vmatprep.subr.bf16.mxu0 %v1219_v38  ;;  %1511 = vmatprep.subr.bf16.mxu1 %v1237_v18 }
 0x29d   : > { %1494 = vmatpush3.bf16.msra.mxu0 %v2323_v34 }
 0x29e   : > { %v1218_v25 = vpack.c.bf16 %v1719_v30, %v1718_v27  ;;  %v1229_v47 = vpack.c.bf16 %v1714_v36, %v1713_v42 }
 0x29f   : > { %v1727_v24 = vpop.permute.xlu0 %1726  ;;  %v1722_v10 = vpop.permute.xlu1 %1721 }
 0x2a0   : > { %v1729_v16 = vunpack.i.h.bf16 %v1727_v24  ;;  %v1728_v61 = vunpack.i.l.bf16 %v1727_v24  ;;  %v1724_v35 = vunpack.i.h.bf16 %v1722_v10  ;;  %v1723_v29 = vunpack.i.l.bf16 %v1722_v10  ;;  %1495 = vmatprep.subr.bf16.mxu0 %v1218_v25  ;;  %1512 = vmatpush3.bf16.msra.mxu1 %v1229_v47 }
 0x2a1   : > { %1496 = vmatpush3.bf16.msra.mxu0 %v2331_v4 }
 0x2a2   : > { %v1228_v54 = vpack.c.bf16 %v1729_v16, %v1728_v61  ;;  %v1236_v26 = vpack.c.bf16 %v1724_v35, %v1723_v29  ;;  %1530 = vmatprep.subr.bf16.mxu0 %v1795_v22 }
 0x2a3   : > { %v1737_v56 = vpop.permute.xlu0 %1736  ;;  %v1732_v21 = vpop.permute.xlu1 %1731 }
 0x2a4   : > { %v1739_v34 = vunpack.i.h.bf16 %v1737_v56  ;;  %v1738_v58 = vunpack.i.l.bf16 %v1737_v56  ;;  %v1734_v40 = vunpack.i.h.bf16 %v1732_v21  ;;  %v1733_v52 = vunpack.i.l.bf16 %v1732_v21  ;;  %1295 = vmatmul.mubr.bf16.vlgmr.msra.gmra.mxu0 %v246_v50  ;;  %1513 = vmatprep.subr.bf16.mxu1 %v1236_v26 }
 0x2a5   : > { %1514 = vmatpush3.bf16.msra.mxu1 %v1228_v54  ;;  %1538 = vmatprep.mubr.msk.bf16.mxu0 %vm1796_vm0, %v1795_v22 }
 0x2a6   : > { %v1235_v32 = vpack.c.bf16 %v1739_v34, %v1738_v58  ;;  %v1245_v43 = vpack.c.bf16 %v1734_v40, %v1733_v52 }
 0x2a7   : > { %v1747_v51 = vpop.permute.xlu0 %1746  ;;  %v1742_v31 = vpop.permute.xlu1 %1741 }
 0x2a8   : > { %v1749_v4 = vunpack.i.h.bf16 %v1747_v51  ;;  %v1748_v49 = vunpack.i.l.bf16 %v1747_v51  ;;  %v1744_v1 = vunpack.i.h.bf16 %v1742_v31  ;;  %v1743_v59 = vunpack.i.l.bf16 %v1742_v31  ;;  %1515 = vmatprep.subr.bf16.mxu1 %v1235_v32  ;;  %1531 = vmatpush3.bf16.msra.mxu0 %v1245_v43 }
 0x2a9   : > { %1532 = vmatprep.subr.bf16.mxu0 %v1795_v22 }
 0x2aa   : > { %v1244_v33 = vpack.c.bf16 %v1749_v4, %v1748_v49  ;;  %v1227_v0 = vpack.c.bf16 %v1744_v1, %v1743_v59 }
 0x2ab   : > { %v1757_v45 = vpop.permute.xlu0 %1756  ;;  %v1752_v6 = vpop.permute.xlu1 %1751 }
 0x2ac   : > { %v1759_v5 = vunpack.i.h.bf16 %v1757_v45  ;;  %v1758_v7 = vunpack.i.l.bf16 %v1757_v45  ;;  %v1754_v8 = vunpack.i.h.bf16 %v1752_v6  ;;  %v1753_v53 = vunpack.i.l.bf16 %v1752_v6  ;;  %1516 = vmatpush3.bf16.msra.mxu1 %v1227_v0  ;;  %1533 = vmatpush3.bf16.msra.mxu0 %v1244_v33 }
 0x2ad   : > { %1534 = vmatprep.subr.bf16.mxu0 %v1795_v22 }
 0x2ae   : > { %v1226_v46 = vpack.c.bf16 %v1759_v5, %v1758_v7  ;;  %v1234_v57 = vpack.c.bf16 %v1754_v8, %v1753_v53 }
 0x2af   : > { %v1767_v2 = vpop.permute.xlu0 %1766  ;;  %v1762_v39 = vpop.permute.xlu1 %1761 }
 0x2b0   : > { %v1764_v60 = vunpack.i.h.bf16 %v1762_v39  ;;  %v1763_v11 = vunpack.i.l.bf16 %v1762_v39  ;;  %1517 = vmatprep.subr.bf16.mxu1 %v1234_v57  ;;  %v1769_v14 = vunpack.i.h.bf16 %v1767_v2  ;;  %v1768_v19 = vunpack.i.l.bf16 %v1767_v2 }
 0x2b1   : > { %1518 = vmatpush3.bf16.msra.mxu1 %v1226_v46 }
 0x2b2   : > { %v1243_v20 = vpack.c.bf16 %v1764_v60, %v1763_v11  ;;  %v1242_v44 = vpack.c.bf16 %v1769_v14, %v1768_v19 }
 0x2b4   : > { %1336 = vmatmul.mubr.bf16.vlgmr.msra.gmra.mxu1 %v248_v12  ;;  %1535 = vmatpush3.bf16.msra.mxu0 %v1243_v20 }
 0x2b5   : > { %1536 = vmatprep.subr.bf16.mxu0 %v1795_v22 }
 0x2b8   : > { %1537 = vmatpush3.bf16.msra.mxu0 %v1242_v44 }
 0x2bb   : > { %1539 = vmatmul.mubr.msk.bf16.vlgmr.msra.gmra.mxu0 %vm1258_vm1, %v250_v48 }
 0x2bc   : > { %v1251_v15 = vpop.permute.xlu1 %1250  ;;  %v1256_v17 = vpop.permute.xlu0 %1255 }
 0x364   : > { %v1497_v62 = vpop.f32.mrf.mxu0 }
 0x366   : > { %v1498_v13 = vpop.f32.mrf.mxu0 }
 0x367   : > { %v1499_v55 = vadd.f32 %v1498_v13, %v1497_v62 }
 0x368   : > { %v1500_v37 = vpop.f32.mrf.mxu0 }
 0x369   : > { %v1297_v30 = vadd.f32 %v1499_v55, %v1251_v15 }
 0x36a   : > { %v1501_v18 = vpop.f32.mrf.mxu0 }
 0x36b   : > { %v1502_v27 = vadd.f32 %v1501_v18, %v1500_v37 }
 0x36d   : > { %v1300_v47 = vadd.f32 %v1502_v27, %v1256_v17 }
 0x374   : > { %v1519_v38 = vpop.f32.mrf.mxu1 }
 0x376   : > { %v1520_v9 = vpop.f32.mrf.mxu1 }
 0x377   : > { %v1521_v36 = vadd.f32 %v1520_v9, %v1519_v38 }
 0x378   : > { %v1522_v42 = vpop.f32.mrf.mxu1 }
 0x379   : > { %v1338_v3 = vadd.f32 %v1521_v36, %v1297_v30 }
 0x37a   : > { %v1523_v25 = vpop.f32.mrf.mxu1 }
 0x37b   : > { %v1524_v24 = vadd.f32 %v1523_v25, %v1522_v42  ;;  %v1378_v10 = vpop.f32.mrf.mxu0 }
 0x37c   : > { %v1379_v50 = vadd.f32 %v1378_v10, %v1338_v3 }
 0x37d   : > { %v1540_v16 = vpop.f32.mrf.mxu0  ;;  %v1341_v61 = vadd.f32 %v1524_v24, %v1300_v47 }
 0x37e   : > { %1387 = vrot.lane.b32.xlu1 %v1379_v50, %s1797_s24 }
 0x37f   : > { %v1381_v35 = vpop.f32.mrf.mxu0 }
 0x380   : > { %v1382_v29 = vadd.f32 %v1381_v35, %v1341_v61 }
 0x381   : > { %v1541_v54 = vpop.f32.mrf.mxu0 }
 0x382   : > { %1389 = vrot.lane.b32.xlu0 %v1382_v29, %s1797_s24  ;;  %1393 = vrot.lane.b32.xlu1 %v1379_v50, %s1788_s15 }
 0x386   : > { %1395 = vrot.lane.b32.xlu0 %v1382_v29, %s1788_s15  ;;  %1399 = vrot.lane.b32.xlu1 %v1379_v50, %s1798_s25 }
 0x38a   : > { %1401 = vrot.lane.b32.xlu0 %v1382_v29, %s1798_s25 }
 0x3f0   : > { %v1388_v26 = vpop.permute.xlu1 %1387 }
 0x3f1   : > { %v1406_v21 = vsel %vm1405_vm2, %v1379_v50, %v1388_v26 }
 0x3f4   : > { %v1390_v22 = vpop.permute.xlu0 %1389  ;;  %v1394_v56 = vpop.permute.xlu1 %1393 }
 0x3f5   : > { %v1409_v34 = vsel %vm1408_vm3, %v1406_v21, %v1394_v56  ;;  %v1407_v32 = vsel %vm1405_vm2, %v1382_v29, %v1390_v22 }
 0x3f8   : > { %v1396_v58 = vpop.permute.xlu0 %1395  ;;  %v1400_v40 = vpop.permute.xlu1 %1399 }
 0x3f9   : > { %v1412_v52 = vsel %vm1411_vm4, %v1409_v34, %v1400_v40  ;;  %v1410_v43 = vsel %vm1408_vm3, %v1407_v32, %v1396_v58 }
 0x3fa   : > { %1415 = vst.msk [vmem:[%s218_s16] sm:$0xff] %vm1414_vm5, %v1412_v52 }
 0x3fc   : > { %v1402_v51 = vpop.permute.xlu0 %1401 }
 0x3fd   : > { %v1413_v31 = vsel %vm1411_vm4, %v1410_v43, %v1402_v51 }
 0x3fe   : > { %1416 = vst.msk [vmem:[%s218_s16 + $0x8] sm:$0xff] %vm1414_vm5, %v1413_v31 }
 0x3ff PF: > { %s15_s18 = sadd.s32 1, %s1776_s18  }
 0x400   : > { %p12_p4 = scmp.ge.s32.totalorder %s15_s18, 4  }
 0x402   :  { %14 = sbr.rel (!%p12_p4) target bundleno = 1 (0x1), region = 70 }

</bundles_post_ra>
